<compile_context>
chip_gen: v6e
topology: v6e:2x2x1
jax: 0.10.0
libtpu: 0.0.40
codegen_flags: <defaults>
</compile_context>

<pallas_src>
import functools

import jax
import jax.numpy as jnp
from jax.experimental import pallas as pl
from jax.experimental.pallas import tpu as pltpu


def _swish_kernel(x_ref, o_ref, *, approx: bool):
    xf = x_ref[...].astype(jnp.float32)
    # sigmoid = 1 / (1 + exp(-x)); exp and the reciprocal both land on the EUP.
    sig = pl.reciprocal(1.0 + jnp.exp(-xf), approx=approx)
    o_ref[...] = (xf * sig).astype(o_ref.dtype)


_LANE_CANDIDATES = (4096, 2048, 1024, 512, 256, 128)
_TARGET_BLOCK_BYTES = 4 * 1024 * 1024      # ~4 MiB/block; in+out double-buffered ~= 16 MiB live
_VMEM_LIMIT_BYTES = 48 * 1024 * 1024       # explicit scoped-VMEM limit (fits v5e/v6e/v7x)
_MEGACORE_SPLIT_BYTES = 1 * 1024 * 1024    # below this, forcing a megacore split isn't worth it
_MIN_MEGACORE_GRID = 4                     # >=2 pipelined steps per TensorCore on v7x


def _is_multicore_chip() -> bool:
    """True for chips with 2 TensorCores sharing the grid (v7x-class megacore)."""
    try:
        kind = jax.devices()[0].device_kind.lower()
    except Exception:
        return False
    return "v7" in kind


def _pick_block_rows(rows: int, target_rows: int, sublane: int) -> int:
    """Largest sublane-multiple <= target; prefer an exact divisor of `rows`."""
    block_rows = max(sublane, (target_rows // sublane) * sublane)
    block_rows = min(block_rows, rows)
    if rows % block_rows == 0:
        return block_rows
    if rows % sublane == 0:
        # Look for a divisor of `rows` not smaller than half the target, so every
        # grid block stays full-sized (unmasked stores, identical DMAs).
        r = block_rows
        while r >= sublane and r * 2 >= block_rows:
            if rows % r == 0:
                return r
            r -= sublane
    return block_rows  # partial last block; Pallas masks it.


def _swish_flat(x_flat: jnp.ndarray) -> jnp.ndarray:
    """Swish on a flat array whose length is a positive multiple of 128."""
    n = x_flat.shape[0]
    dtype = x_flat.dtype
    itemsize = jnp.dtype(dtype).itemsize
    # Sublane tile multiple for the packed dtype: f32 -> 8, bf16 -> 16, int8/fp8 -> 32.
    sublane = max(8, 32 // itemsize)

    # Largest lane-dense width dividing n -> unmasked stores, few large DMA descriptors.
    lanes = 128
    for cand in _LANE_CANDIDATES:
        if n % cand == 0:
            lanes = cand
            break
    rows = n // lanes

    # Rows per block targeting ~_TARGET_BLOCK_BYTES.
    row_bytes = lanes * itemsize
    target_rows = max(sublane, _TARGET_BLOCK_BYTES // row_bytes)
    target_rows = min(target_rows, rows)

    # On 2-TensorCore chips, make sure large inputs produce >= _MIN_MEGACORE_GRID
    # blocks so each core gets >=2 steps (DMA/compute overlap on both cores).
    if _is_multicore_chip() and n * itemsize > _MEGACORE_SPLIT_BYTES:
        per_core_rows = max(sublane, rows // _MIN_MEGACORE_GRID)
        target_rows = min(target_rows, per_core_rows)

    block_rows = _pick_block_rows(rows, target_rows, sublane)
    grid = (pl.cdiv(rows, block_rows),)

    x2d = x_flat.reshape(rows, lanes)
    approx = itemsize < 4  # sub-f32 outputs: approximate (pure-EUP) reciprocal is invisible

    out2d = pl.pallas_call(
        functools.partial(_swish_kernel, approx=approx),
        out_shape=jax.ShapeDtypeStruct((rows, lanes), dtype),
        grid_spec=pltpu.PrefetchScalarGridSpec(
            num_scalar_prefetch=0,
            grid=grid,
            in_specs=[pl.BlockSpec((block_rows, lanes), lambda i: (i, 0))],
            out_specs=pl.BlockSpec((block_rows, lanes), lambda i: (i, 0)),
        ),
        compiler_params=pltpu.CompilerParams(
            dimension_semantics=("parallel",),
            vmem_limit_bytes=_VMEM_LIMIT_BYTES,
        ),
        cost_estimate=pl.CostEstimate(
            flops=4 * n, transcendentals=n, bytes_accessed=2 * n * itemsize
        ),
    )(x2d)
    return out2d.reshape(-1)


def swish(x: jnp.ndarray) -> jnp.ndarray:
    """Elementwise Swish / SiLU: x * sigmoid(x); same shape & dtype as the input."""
    orig_shape = x.shape
    n = x.size
    if n == 0:
        return x

    x_flat = x.reshape(-1)
    rem = n % 128
    if rem == 0:
        return _swish_flat(x_flat).reshape(orig_shape)
    if n < 128:
        # Too small for a lane-dense kernel launch: plain JAX, same math.
        xf = x_flat.astype(jnp.float32)
        out = (xf * (1.0 / (1.0 + jnp.exp(-xf)))).astype(x.dtype)
        return out.reshape(orig_shape)
    # Ragged tail: pad the input once by <=127 elements so a single kernel pass
    # covers everything (no output concatenate => no extra HBM pass on the bulk).
    pad = 128 - rem
    out = _swish_flat(jnp.pad(x_flat, (0, pad)))[:n]
    return out.reshape(orig_shape)


if __name__ == "__main__":
    key = jax.random.PRNGKey(0)
    # Small NCHW-style input consistent with typical usage of Swish in a CNN/MLP.
    x = jax.random.normal(key, (2, 4, 16, 16), dtype=jnp.float32)

    y = jax.block_until_ready(swish(x))

    # Reference check in plain JAX.
    y_ref = x * jax.nn.sigmoid(x)
    assert y.shape == x.shape and y.dtype == x.dtype
    assert jnp.allclose(y, y_ref, atol=1e-6, rtol=1e-6)

    print("KERNEL_OK")
</pallas_src>

<mosaic_0001>
module attributes {stable_mosaic.version = 11 : i64} {
  func.func @_swish_kernel(%arg0: i32, %arg1: memref<1x2048xf32, #tpu.memory_space<vmem>>, %arg2: memref<1x2048xf32, #tpu.memory_space<vmem>>) attributes {dimension_semantics = [#tpu.dimension_semantics<parallel>], iteration_bounds = array<i64: 1>, scalar_prefetch = 0 : i64, scratch_operands = 0 : i64, tpu.core_type = #tpu.core_type<tc>, window_params = [{transform_indices = @transform_0, window_bounds = array<i64: 1, 2048>}, {transform_indices = @transform_1, window_bounds = array<i64: 1, 2048>}]} {
    %c0 = arith.constant 0 : index
    %c0_0 = arith.constant 0 : index
    %0 = vector.load %arg1[%c0, %c0_0] : memref<1x2048xf32, #tpu.memory_space<vmem>>, vector<1x2048xf32>
    %cst = arith.constant 0.000000e+00 : f32
    %1 = vector.broadcast %cst : f32 to vector<1x2048xf32>
    %2 = arith.subf %1, %0 : vector<1x2048xf32>
    %3 = math.exp %2 : vector<1x2048xf32>
    %cst_1 = arith.constant 1.000000e+00 : f32
    %4 = vector.broadcast %cst_1 : f32 to vector<1x2048xf32>
    %5 = arith.addf %4, %3 : vector<1x2048xf32>
    %6 = tpu.reciprocal %5 : vector<1x2048xf32> -> vector<1x2048xf32>
    %7 = arith.mulf %0, %6 : vector<1x2048xf32>
    %c0_2 = arith.constant 0 : index
    %c0_3 = arith.constant 0 : index
    %8 = vector.load %arg2[%c0_2, %c0_3] : memref<1x2048xf32, #tpu.memory_space<vmem>>, vector<1x2048xf32>
    tpu.vector_store %arg2[%c0_2, %c0_3], %7 {strides = array<i32>} : memref<1x2048xf32, #tpu.memory_space<vmem>>, vector<1x2048xf32>,
    return
  }
  func.func @transform_0(%arg0: i32) -> (i32, i32) {
    %c0_i32 = arith.constant 0 : i32
    %c0_i32_0 = arith.constant 0 : i32
    return %arg0, %c0_i32 : i32, i32
  }
  func.func @transform_1(%arg0: i32) -> (i32, i32) {
    %c0_i32 = arith.constant 0 : i32
    %c0_i32_0 = arith.constant 0 : i32
    return %arg0, %c0_i32 : i32, i32
  }
}

</mosaic_0001>

<bundles_post_ra>
// kernel: tpu_custom_call.1
= control target key start
LH: loop header
LB: loop body
LE: loop exit
PB: predicated region body
PF: predicated region fallthrough
CT: control target
= control target key end

     0   :  { %6 = vsyncpa [#allocation3], 0  ;;  %s124_s0 = inlined_call_operand.hbm [shape: f32[1,2048], index: 0, kind: input, shape index: {}]   ;;  %s125_s1 = inlined_call_operand.hbm [shape: f32[1,2048], index: 1, kind: output, shape index: {}]  }
   0x1   :  { %7 = vsyncpa [#allocation4], 0  ;;  %s106_s6 = smov [#allocation2]  }
   0x2   :  { %s14_s7 = sshll.u32 %s106_s6, 4  ;;  %s15_s7 = int_to_ptr.vmem [resolvable:$true] %s14_s7 }
   0x3   :  { %s70_s8 = scalar_lea.vmem %s15_s7, 256  ;;  %p75_p1 = scmp.lt.s32.totalorder %s15_s7, %s15_s7 }
   0x4   :  { %p71_p0 = scmp.ne.s32.totalorder %s15_s7, %s70_s8  ;;  %p76_p2 = scmp.lt.s32.totalorder %s70_s8, %s70_s8 }
   0x6   :  { %p77_p3 = por %p76_p2, %p75_p1 }
   0x8   :  { %p78_p4 = pnand %p77_p3, %p71_p0 }
   0xa   :  { %81 = shalt.err (!%p78_p4)
}
   0xb   :  { %17 = dma.hbm_to_vmem [thread:$0]  %s124_s0, 256, %s15_s7, [#allocation3]  }
   0xc   :  { %102 = dma.done.wait [#allocation3], 256  }
   0xd   :  { %103 = vsyncadd [#allocation3], 4294967040  ;;  %v21_v0 = vld [vmem:[#allocation2] sm:$0xff]  ;;  %v22_v1 = vld [vmem:[#allocation2 + $0x8] sm:$0xff]  ;;  %s107_s11 = smov [#allocation5]  }
   0xe   :  { %v23_v2 = vsub.f32 0.0, %v21_v0  ;;  %v24_v3 = vsub.f32 0.0, %v22_v1  ;;  %s43_s12 = sshll.u32 %s107_s11, 4  ;;  %s44_s12 = int_to_ptr.vmem [resolvable:$true] %s43_s12 }
   0xf   :  { %s82_s0 = scalar_lea.vmem %s44_s12, 256  ;;  %p87_p6 = scmp.lt.s32.totalorder %s44_s12, %s44_s12 }
  0x10   :  { %v25_v4 = vmul.f32 1.442695, %v23_v2  ;;  %v27_v5 = vmul.f32 1.442695, %v24_v3  ;;  %p83_p5 = scmp.ne.s32.totalorder %s44_s12, %s82_s0  ;;  %p88_p7 = scmp.lt.s32.totalorder %s82_s0, %s82_s0 }
  0x12   :  { %54 = vpow2.f32 %v25_v4  ;;  %p89_p8 = por %p88_p7, %p87_p6 }
  0x13   :  { %56 = vpow2.f32 %v27_v5 }
  0x14   :  { %p90_p9 = pnand %p89_p8, %p83_p5 }
  0x1f   :  { %v55_v6 = vpop.eup %54 }
  0x20   :  { %v57_v7 = vpop.eup %56  ;;  %v29_v8 = vadd.f32 1.0, %v55_v6 }
  0x21   :  { %v30_v9 = vadd.f32 1.0, %v57_v7 }
  0x22   :  { %58 = vrcp.f32 %v29_v8 }
  0x23   :  { %60 = vrcp.f32 %v30_v9 }
  0x2f   :  { %v59_v10 = vpop.eup %58 }
  0x30   :  { %v61_v11 = vpop.eup %60  ;;  %v33_v12 = vmul.f32 %v59_v10, %v21_v0 }
  0x31   :  { %v34_v13 = vmul.f32 %v61_v11, %v22_v1 }
  0x32   :  { %35 = vst [vmem:[#allocation5] sm:$0xff] %v33_v12 }
  0x33   :  { %36 = vst [vmem:[#allocation5 + $0x8] sm:$0xff] %v34_v13 }
  0x34   :  { %93 = shalt.err (!%p90_p9)
}
  0x35   :  { %46 = dma.vmem_to_hbm [thread:$0]  %s44_s12, 256, %s125_s1, [#allocation4]  }
  0x36   :  { %104 = dma.done.wait [#allocation4], 256  }
  0x37   :  { %105 = vsyncadd [#allocation4], 4294967040 }
  0x38   :  { %50 = vsyncpa [#allocation3], 1 }
  0x39   :  { %51 = vsyncpa [#allocation4], 1 }

</bundles_post_ra>
